<compile_context>
chip_gen: v7x
topology: tpu7x:2x2x1
jax: 0.10.0
libtpu: 0.0.40
codegen_flags: <defaults>
</compile_context>

<pallas_src>
import math
from functools import partial

import jax
import jax.numpy as jnp
from jax.experimental import pallas as pl
from jax.experimental.pallas import tpu as pltpu

# ---------------------------------------------------------------------------
# Small model configuration (scaled-down EfficientNet-B5 head)
# ---------------------------------------------------------------------------
N = 2              # batch
H = W = 16         # spatial
HW = H * W
CIN = 4            # input channels
CFEAT = 32         # backbone feature channels   (real b5: 2048)
FPOOL = 2 * CFEAT  # catavgmax output             (real b5: 4096)
HIDDEN = 128       # last_layer width             (real model: 1024)
NUM_CLASSES = 100
CPAD = ((NUM_CLASSES + 127) // 128) * 128   # lane-dense padded class dim

# ArcMarginProduct defaults
ARC_S = 30.0
ARC_M = 0.50
COS_M = math.cos(ARC_M)
SIN_M = math.sin(ARC_M)
TH = math.cos(math.pi - ARC_M)
MM = math.sin(math.pi - ARC_M) * ARC_M


# ---------------------------------------------------------------------------
# Fused kernel: backbone proxy + catavgmax + (Linear*BN) + PReLU + ArcFace
# ---------------------------------------------------------------------------
def fused_kernel(x_ref, labels_ref, stem_wb_ref, w1b_ref, wn_ref, prelu_ref,
                 out_ref, *, s, cos_m, sin_m, th, mm, n, hw, cfeat):
    # x_ref:       (CIN+1, N*HW)  f32   lane-dense images, last row = ones
    # labels_ref:  (N,)           i32   SMEM
    # stem_wb_ref: (CFEAT, CIN+1) f32   pointwise conv weight, last col = bias
    # w1b_ref:     (2*CFEAT+1, HIDDEN) bf16  BN-folded Linear (sum/max halves)
    #                                         + folded bias in the last row
    # wn_ref:      (HIDDEN, CPAD) bf16  pre-normalized ArcFace weight (padded)
    # prelu_ref:   (1,)           f32   SMEM scalar
    # out_ref:     (N, CPAD)      f32

    # ---- backbone proxy: pointwise conv (+bias via ones row) + swish -------
    # K = CIN+1 is degenerate on the MXU; at real dims this is a full matmul.
    y = jnp.dot(stem_wb_ref[...], x_ref[...],
                preferred_element_type=jnp.float32)          # (CFEAT, N*HW)
    y = y * jax.nn.sigmoid(y)                                # swish / SiLU, f32

    # ---- catavgmax pooling: per-batch static lane slices (no reshape) ------
    lane_ids = jax.lax.broadcasted_iota(jnp.int32, (cfeat, n), 1)
    sum_cols = jnp.zeros((cfeat, n), jnp.float32)
    max_cols = jnp.zeros((cfeat, n), jnp.float32)
    for b in range(n):                                       # static, n == 2
        y_b = y[:, b * hw:(b + 1) * hw]                      # (CFEAT, HW)
        s_b = jnp.sum(y_b, axis=1, keepdims=True)            # (CFEAT, 1)
        m_b = jnp.max(y_b, axis=1, keepdims=True)            # (CFEAT, 1)
        sum_cols = jnp.where(lane_ids == b, s_b, sum_cols)
        max_cols = jnp.where(lane_ids == b, m_b, max_cols)
    pooled_t = jnp.concatenate([sum_cols, max_cols], axis=0)  # (2*CFEAT, N)

    # Transpose (2*CFEAT, N) -> (N, 2*CFEAT) on the MXU (NT dot with identity)
    # to avoid a small-shape cross-lane transpose.
    eye = (jax.lax.broadcasted_iota(jnp.int32, (n, n), 0)
           == jax.lax.broadcasted_iota(jnp.int32, (n, n), 1)
           ).astype(jnp.float32)
    pooled = jax.lax.dot_general(
        eye, pooled_t, (((1,), (1,)), ((), ())),
        preferred_element_type=jnp.float32)                  # (N, 2*CFEAT)

    # ---- last_layer: Linear + BatchNorm1d(eval), folded; 1/hw in avg half --
    w1b = w1b_ref[...]                                       # (2*CFEAT+1, HIDDEN)
    h = jnp.dot(pooled.astype(jnp.bfloat16), w1b[0:2 * cfeat, :],
                preferred_element_type=jnp.float32)          # (N, HIDDEN)
    h = h + w1b[2 * cfeat:2 * cfeat + 1, :].astype(jnp.float32)

    # PReLU (single shared parameter, read as SMEM scalar)
    alpha = prelu_ref[0]
    h = jnp.where(h >= 0.0, h, alpha * h)

    # ---- ArcMarginProduct ---------------------------------------------------
    inv_norm = jax.lax.rsqrt(
        jnp.maximum(jnp.sum(h * h, axis=-1, keepdims=True), 1e-24))
    x_n = h * inv_norm
    cosine = jnp.dot(x_n.astype(jnp.bfloat16), wn_ref[...],
                     preferred_element_type=jnp.float32)     # (N, CPAD)

    sine = jnp.sqrt(jnp.clip(1.0 - cosine * cosine, 0.0, 1.0))
    phi = cosine * cos_m - sine * sin_m
    phi = jnp.where(cosine > th, phi, cosine - mm)   # easy_margin=False branch

    cpad = out_ref.shape[1]
    class_ids = jax.lax.broadcasted_iota(jnp.int32, (n, cpad), 1)
    row_ids = jax.lax.broadcasted_iota(jnp.int32, (n, cpad), 0)
    lbl = jnp.full((n, cpad), -1, jnp.int32)                 # -1 never matches
    for b in range(n):                                       # labels from SMEM
        lbl = jnp.where(row_ids == b, labels_ref[b], lbl)

    # single vselect instead of float one-hot blend
    out_ref[...] = jnp.where(class_ids == lbl, phi, cosine) * s


# ---------------------------------------------------------------------------
# Wrapper
# ---------------------------------------------------------------------------
def sorghum_forward(images_nchw, labels, params):
    """images_nchw: (N, CIN, H, W) f32, labels: (N,) int -> (N, NUM_CLASSES)."""
    n, cin, h, w = images_nchw.shape
    hw = h * w

    # NCHW -> (CIN, N*HW): large dim minor (lane-dense), plus a ones row so the
    # stem bias is part of the stem matmul (one fewer operand / DMA).
    x_t = jnp.transpose(images_nchw, (1, 0, 2, 3)).reshape(cin, n * hw)
    x_aug = jnp.concatenate(
        [x_t, jnp.ones((1, n * hw), jnp.float32)], axis=0)   # (CIN+1, N*HW)

    # Stem weight + bias merged: (CFEAT, CIN+1).
    stem_wb = jnp.concatenate(
        [params["stem_w"].T, params["stem_b"].reshape(CFEAT, 1)], axis=1)

    # Fold eval-mode BatchNorm1d into the Linear weight/bias, fold the 1/hw
    # avg-pool scale into the avg half, append the bias as an extra row, bf16.
    eps = 1e-5
    bn_scale = params["bn_gamma"] / jnp.sqrt(params["bn_var"] + eps)
    bn_shift = params["bn_beta"] - params["bn_mean"] * bn_scale
    w1_fold = params["w1"] * bn_scale[None, :]                # (FPOOL, HIDDEN)
    w1_fold = w1_fold.at[:CFEAT].multiply(1.0 / hw)           # sum-pool, not mean
    bias_fold = (params["b1"].reshape(-1) * bn_scale + bn_shift).reshape(1, HIDDEN)
    w1b = jnp.concatenate([w1_fold, bias_fold], axis=0).astype(jnp.bfloat16)

    # Pre-normalize ArcFace weight columns (static), pad classes to 128, bf16.
    wc_t = params["arc_w_t"]                                  # (HIDDEN, C)
    w_n = wc_t / jnp.maximum(
        jnp.sqrt(jnp.sum(wc_t * wc_t, axis=0, keepdims=True)), 1e-12)
    w_n = jnp.pad(w_n, ((0, 0), (0, CPAD - NUM_CLASSES))).astype(jnp.bfloat16)

    labels_i32 = labels.astype(jnp.int32).reshape(n)
    prelu = params["prelu"].reshape(1).astype(jnp.float32)

    vmem = pl.BlockSpec(memory_space=pltpu.MemorySpace.VMEM)
    smem = pl.BlockSpec(memory_space=pltpu.MemorySpace.SMEM)

    # Advisory cost estimate so XLA schedules the glue ops around the call.
    flops = (2 * CFEAT * (cin + 1) * n * hw        # stem
             + 2 * n * (2 * CFEAT) * HIDDEN        # folded Linear
             + 2 * n * HIDDEN * CPAD               # ArcFace cosine
             + 12 * n * CPAD)                      # margin epilogue
    transcendentals = n * hw * CFEAT + n * CPAD + n
    bytes_accessed = (x_aug.size * 4 + stem_wb.size * 4 + w1b.size * 2
                      + w_n.size * 2 + n * CPAD * 4 + n * 4 + 4)

    out = pl.pallas_call(
        partial(fused_kernel, s=ARC_S, cos_m=COS_M, sin_m=SIN_M,
                th=TH, mm=MM, n=n, hw=hw, cfeat=CFEAT),
        out_shape=jax.ShapeDtypeStruct((n, CPAD), jnp.float32),
        in_specs=[vmem,    # x (lane-dense, ones row appended)
                  smem,    # labels
                  vmem,    # stem weight+bias
                  vmem,    # folded Linear weight halves + bias row (bf16)
                  vmem,    # normalized ArcFace weight (bf16)
                  smem],   # prelu scalar
        out_specs=vmem,
        cost_estimate=pl.CostEstimate(flops=flops,
                                      transcendentals=transcendentals,
                                      bytes_accessed=bytes_accessed),
    )(x_aug, labels_i32, stem_wb, w1b, w_n, prelu)

    return out[:, :NUM_CLASSES]


def init_params(key):
    ks = jax.random.split(key, 6)
    params = {
        # backbone-proxy stem (pointwise conv)
        "stem_w": jax.random.normal(ks[0], (CIN, CFEAT), jnp.float32) * 0.1,
        "stem_b": jnp.zeros((1, CFEAT), jnp.float32),
        # last_layer: Linear(FPOOL, HIDDEN)
        "w1": jax.random.normal(ks[1], (FPOOL, HIDDEN), jnp.float32)
              * (1.0 / math.sqrt(FPOOL)),
        "b1": jnp.zeros((1, HIDDEN), jnp.float32),
        # BatchNorm1d(HIDDEN) — default init, eval-mode running stats
        "bn_gamma": jnp.ones((HIDDEN,), jnp.float32),
        "bn_beta": jnp.zeros((HIDDEN,), jnp.float32),
        "bn_mean": jnp.zeros((HIDDEN,), jnp.float32),
        "bn_var": jnp.ones((HIDDEN,), jnp.float32),
        # PReLU() default single parameter = 0.25
        "prelu": jnp.full((1,), 0.25, jnp.float32),
        # ArcMarginProduct weight (NUM_CLASSES, HIDDEN), stored transposed
        "arc_w_t": (jax.random.normal(ks[2], (NUM_CLASSES, HIDDEN), jnp.float32)
                    * (1.0 / math.sqrt(HIDDEN))).T,
    }
    return params


if __name__ == "__main__":
    key = jax.random.PRNGKey(0)
    k_img, k_param = jax.random.split(key)

    images = jax.random.normal(k_img, (N, CIN, H, W), jnp.float32)  # NCHW
    labels = jnp.array([3, 17], dtype=jnp.int32)
    params = init_params(k_param)

    preds = sorghum_forward(images, labels, params)
    preds = jax.block_until_ready(preds)

    assert preds.shape == (N, NUM_CLASSES), preds.shape
    assert preds.dtype == jnp.float32
    assert bool(jnp.all(jnp.isfinite(preds)))
    print("KERNEL_OK")
</pallas_src>

<mosaic_0001>
module attributes {stable_mosaic.version = 11 : i64} {
  func.func @fused_kernel(%arg0: memref<5x512xf32, #tpu.memory_space<vmem>>, %arg1: memref<2xi32, #tpu.memory_space<smem>>, %arg2: memref<32x5xf32, #tpu.memory_space<vmem>>, %arg3: memref<65x128xbf16, #tpu.memory_space<vmem>>, %arg4: memref<128x128xbf16, #tpu.memory_space<vmem>>, %arg5: memref<1xf32, #tpu.memory_space<smem>>, %arg6: memref<2x128xf32, #tpu.memory_space<vmem>>) attributes {dimension_semantics = [], scalar_prefetch = 0 : i64, scratch_operands = 0 : i64, tpu.core_type = #tpu.core_type<tc>} {
    %c0 = arith.constant 0 : index
    %c0_0 = arith.constant 0 : index
    %0 = vector.load %arg2[%c0, %c0_0] : memref<32x5xf32, #tpu.memory_space<vmem>>, vector<32x5xf32>
    %c0_1 = arith.constant 0 : index
    %c0_2 = arith.constant 0 : index
    %1 = vector.load %arg0[%c0_1, %c0_2] : memref<5x512xf32, #tpu.memory_space<vmem>>, vector<5x512xf32>
    %cst = arith.constant dense<0.000000e+00> : vector<32x512xf32>
    %2 = tpu.matmul %0, %1, %cst {dimension_numbers = #tpu.dot_dimension_numbers<[1], [0], [0], [1], [0, 0, 1, 1], [], []>} : vector<32x5xf32>, vector<5x512xf32>, vector<32x512xf32> -> vector<32x512xf32>
    %3 = arith.negf %2 : vector<32x512xf32>
    %4 = math.exp %3 : vector<32x512xf32>
    %cst_3 = arith.constant 1.000000e+00 : f32
    %5 = vector.broadcast %cst_3 : f32 to vector<32x512xf32>
    %6 = arith.addf %5, %4 : vector<32x512xf32>
    %7 = arith.divf %5, %6 : vector<32x512xf32>
    %8 = arith.mulf %2, %7 : vector<32x512xf32>
    %9 = tpu.iota {dimensions = array<i32: 1>} : vector<32x2xi32>
    %cst_4 = arith.constant 0.000000e+00 : f32
    %10 = vector.broadcast %cst_4 : f32 to vector<32x2xf32>
    %cst_5 = arith.constant 0.000000e+00 : f32
    %11 = vector.broadcast %cst_5 : f32 to vector<32x2xf32>
    %12 = vector.extract_strided_slice %8 {offsets = [0, 0], sizes = [32, 256], strides = [1, 1]} : vector<32x512xf32> to vector<32x256xf32>
    %cst_6 = arith.constant dense<0.000000e+00> : vector<32xf32>
    %13 = vector.multi_reduction <add>, %12, %cst_6 [1] : vector<32x256xf32> to vector<32xf32>
    %14 = vector.shape_cast %13 : vector<32xf32> to vector<32x1xf32>
    %cst_7 = arith.constant dense<0xFF800000> : vector<32xf32>
    %15 = vector.multi_reduction <maximumf>, %12, %cst_7 [1] : vector<32x256xf32> to vector<32xf32>
    %16 = vector.shape_cast %15 : vector<32xf32> to vector<32x1xf32>
    %c0_i32 = arith.constant 0 : i32
    %17 = vector.broadcast %c0_i32 : i32 to vector<32x2xi32>
    %18 = arith.cmpi eq, %9, %17 : vector<32x2xi32>
    %19 = vector.shape_cast %14 : vector<32x1xf32> to vector<32x1xf32>
    %20 = vector.broadcast %19 : vector<32x1xf32> to vector<32x2xf32>
    %21 = arith.select %18, %20, %10 : vector<32x2xi1>, vector<32x2xf32>
    %c0_i32_8 = arith.constant 0 : i32
    %22 = vector.broadcast %c0_i32_8 : i32 to vector<32x2xi32>
    %23 = arith.cmpi eq, %9, %22 : vector<32x2xi32>
    %24 = vector.shape_cast %16 : vector<32x1xf32> to vector<32x1xf32>
    %25 = vector.broadcast %24 : vector<32x1xf32> to vector<32x2xf32>
    %26 = arith.select %23, %25, %11 : vector<32x2xi1>, vector<32x2xf32>
    %27 = vector.extract_strided_slice %8 {offsets = [0, 256], sizes = [32, 256], strides = [1, 1]} : vector<32x512xf32> to vector<32x256xf32>
    %cst_9 = arith.constant dense<0.000000e+00> : vector<32xf32>
    %28 = vector.multi_reduction <add>, %27, %cst_9 [1] : vector<32x256xf32> to vector<32xf32>
    %29 = vector.shape_cast %28 : vector<32xf32> to vector<32x1xf32>
    %cst_10 = arith.constant dense<0xFF800000> : vector<32xf32>
    %30 = vector.multi_reduction <maximumf>, %27, %cst_10 [1] : vector<32x256xf32> to vector<32xf32>
    %31 = vector.shape_cast %30 : vector<32xf32> to vector<32x1xf32>
    %c1_i32 = arith.constant 1 : i32
    %32 = vector.broadcast %c1_i32 : i32 to vector<32x2xi32>
    %33 = arith.cmpi eq, %9, %32 : vector<32x2xi32>
    %34 = vector.shape_cast %29 : vector<32x1xf32> to vector<32x1xf32>
    %35 = vector.broadcast %34 : vector<32x1xf32> to vector<32x2xf32>
    %36 = arith.select %33, %35, %21 : vector<32x2xi1>, vector<32x2xf32>
    %c1_i32_11 = arith.constant 1 : i32
    %37 = vector.broadcast %c1_i32_11 : i32 to vector<32x2xi32>
    %38 = arith.cmpi eq, %9, %37 : vector<32x2xi32>
    %39 = vector.shape_cast %31 : vector<32x1xf32> to vector<32x1xf32>
    %40 = vector.broadcast %39 : vector<32x1xf32> to vector<32x2xf32>
    %41 = arith.select %38, %40, %26 : vector<32x2xi1>, vector<32x2xf32>
    %42 = tpu.concatenate %36, %41 in 0 : vector<32x2xf32>, vector<32x2xf32> -> vector<64x2xf32>
    %43 = tpu.iota {dimensions = array<i32: 0>} : vector<2x2xi32>
    %44 = tpu.iota {dimensions = array<i32: 1>} : vector<2x2xi32>
    %45 = arith.cmpi eq, %43, %44 : vector<2x2xi32>
    %46 = arith.extui %45 : vector<2x2xi1> to vector<2x2xi32>
    %47 = arith.sitofp %46 : vector<2x2xi32> to vector<2x2xf32>
    %cst_12 = arith.constant dense<0.000000e+00> : vector<2x64xf32>
    %48 = tpu.matmul %47, %42, %cst_12 {dimension_numbers = #tpu.dot_dimension_numbers<[1], [1], [0], [0], [0, 0, 1, 0], [], []>} : vector<2x2xf32>, vector<64x2xf32>, vector<2x64xf32> -> vector<2x64xf32>
    %c0_13 = arith.constant 0 : index
    %c0_14 = arith.constant 0 : index
    %49 = vector.load %arg3[%c0_13, %c0_14] : memref<65x128xbf16, #tpu.memory_space<vmem>>, vector<65x128xbf16>
    %50 = arith.truncf %48 : vector<2x64xf32> to vector<2x64xbf16>
    %51 = vector.extract_strided_slice %49 {offsets = [0, 0], sizes = [64, 128], strides = [1, 1]} : vector<65x128xbf16> to vector<64x128xbf16>
    %cst_15 = arith.constant dense<0.000000e+00> : vector<2x128xf32>
    %52 = tpu.matmul %50, %51, %cst_15 {dimension_numbers = #tpu.dot_dimension_numbers<[1], [0], [0], [1], [0, 0, 1, 1], [], []>} : vector<2x64xbf16>, vector<64x128xbf16>, vector<2x128xf32> -> vector<2x128xf32>
    %53 = vector.extract_strided_slice %49 {offsets = [64, 0], sizes = [1, 128], strides = [1, 1]} : vector<65x128xbf16> to vector<1x128xbf16>
    %54 = arith.extf %53 : vector<1x128xbf16> to vector<1x128xf32>
    %55 = vector.broadcast %54 : vector<1x128xf32> to vector<2x128xf32>
    %56 = arith.addf %52, %55 : vector<2x128xf32>
    %c0_16 = arith.constant 0 : index
    %57 = memref.load %arg5[%c0_16] : memref<1xf32, #tpu.memory_space<smem>>
    %cst_17 = arith.constant 0.000000e+00 : f32
    %58 = vector.broadcast %cst_17 : f32 to vector<2x128xf32>
    %59 = arith.cmpf oge, %56, %58 : vector<2x128xf32>
    %60 = vector.broadcast %57 : f32 to vector<2x128xf32>
    %61 = arith.mulf %60, %56 : vector<2x128xf32>
    %62 = arith.select %59, %56, %61 : vector<2x128xi1>, vector<2x128xf32>
    %63 = arith.mulf %62, %62 : vector<2x128xf32>
    %cst_18 = arith.constant dense<0.000000e+00> : vector<2xf32>
    %64 = vector.multi_reduction <add>, %63, %cst_18 [1] : vector<2x128xf32> to vector<2xf32>
    %65 = vector.shape_cast %64 : vector<2xf32> to vector<2x1xf32>
    %cst_19 = arith.constant 1.000000e-24 : f32
    %66 = vector.broadcast %cst_19 : f32 to vector<2x1xf32>
    %67 = arith.maximumf %65, %66 : vector<2x1xf32>
    %68 = math.rsqrt %67 : vector<2x1xf32>
    %69 = vector.broadcast %68 : vector<2x1xf32> to vector<2x128xf32>
    %70 = arith.mulf %62, %69 : vector<2x128xf32>
    %71 = arith.truncf %70 : vector<2x128xf32> to vector<2x128xbf16>
    %c0_20 = arith.constant 0 : index
    %c0_21 = arith.constant 0 : index
    %72 = vector.load %arg4[%c0_20, %c0_21] : memref<128x128xbf16, #tpu.memory_space<vmem>>, vector<128x128xbf16>
    %cst_22 = arith.constant dense<0.000000e+00> : vector<2x128xf32>
    %73 = tpu.matmul %71, %72, %cst_22 {dimension_numbers = #tpu.dot_dimension_numbers<[1], [0], [0], [1], [0, 0, 1, 1], [], []>} : vector<2x128xbf16>, vector<128x128xbf16>, vector<2x128xf32> -> vector<2x128xf32>
    %74 = arith.mulf %73, %73 : vector<2x128xf32>
    %cst_23 = arith.constant 1.000000e+00 : f32
    %75 = vector.broadcast %cst_23 : f32 to vector<2x128xf32>
    %76 = arith.subf %75, %74 : vector<2x128xf32>
    %cst_24 = arith.constant 0.000000e+00 : f32
    %cst_25 = arith.constant 1.000000e+00 : f32
    %77 = vector.broadcast %cst_24 : f32 to vector<2x128xf32>
    %78 = arith.maximumf %77, %76 : vector<2x128xf32>
    %79 = vector.broadcast %cst_25 : f32 to vector<2x128xf32>
    %80 = arith.minimumf %79, %78 : vector<2x128xf32>
    %81 = math.sqrt %80 : vector<2x128xf32>
    %cst_26 = arith.constant 0.87758255 : f32
    %82 = vector.broadcast %cst_26 : f32 to vector<2x128xf32>
    %83 = arith.mulf %73, %82 : vector<2x128xf32>
    %cst_27 = arith.constant 0.47942555 : f32
    %84 = vector.broadcast %cst_27 : f32 to vector<2x128xf32>
    %85 = arith.mulf %81, %84 : vector<2x128xf32>
    %86 = arith.subf %83, %85 : vector<2x128xf32>
    %cst_28 = arith.constant -0.87758255 : f32
    %87 = vector.broadcast %cst_28 : f32 to vector<2x128xf32>
    %88 = arith.cmpf ogt, %73, %87 : vector<2x128xf32>
    %cst_29 = arith.constant 0.239712775 : f32
    %89 = vector.broadcast %cst_29 : f32 to vector<2x128xf32>
    %90 = arith.subf %73, %89 : vector<2x128xf32>
    %91 = arith.select %88, %86, %90 : vector<2x128xi1>, vector<2x128xf32>
    %92 = tpu.iota {dimensions = array<i32: 1>} : vector<2x128xi32>
    %93 = tpu.iota {dimensions = array<i32: 0>} : vector<2x128xi32>
    %c-1_i32 = arith.constant -1 : i32
    %94 = vector.broadcast %c-1_i32 : i32 to vector<2x128xi32>
    %c0_i32_30 = arith.constant 0 : i32
    %95 = vector.broadcast %c0_i32_30 : i32 to vector<2x128xi32>
    %96 = arith.cmpi eq, %93, %95 : vector<2x128xi32>
    %c0_31 = arith.constant 0 : index
    %97 = memref.load %arg1[%c0_31] : memref<2xi32, #tpu.memory_space<smem>>
    %98 = vector.broadcast %97 : i32 to vector<2x128xi32>
    %99 = arith.select %96, %98, %94 : vector<2x128xi1>, vector<2x128xi32>
    %c1_i32_32 = arith.constant 1 : i32
    %100 = vector.broadcast %c1_i32_32 : i32 to vector<2x128xi32>
    %101 = arith.cmpi eq, %93, %100 : vector<2x128xi32>
    %c1 = arith.constant 1 : index
    %102 = memref.load %arg1[%c1] : memref<2xi32, #tpu.memory_space<smem>>
    %103 = vector.broadcast %102 : i32 to vector<2x128xi32>
    %104 = arith.select %101, %103, %99 : vector<2x128xi1>, vector<2x128xi32>
    %105 = arith.cmpi eq, %92, %104 : vector<2x128xi32>
    %106 = arith.select %105, %91, %73 : vector<2x128xi1>, vector<2x128xf32>
    %cst_33 = arith.constant 3.000000e+01 : f32
    %107 = vector.broadcast %cst_33 : f32 to vector<2x128xf32>
    %108 = arith.mulf %106, %107 : vector<2x128xf32>
    %c0_34 = arith.constant 0 : index
    %c0_35 = arith.constant 0 : index
    %109 = vector.load %arg6[%c0_34, %c0_35] : memref<2x128xf32, #tpu.memory_space<vmem>>, vector<2x128xf32>
    tpu.vector_store %arg6[%c0_34, %c0_35], %108 {strides = array<i32>} : memref<2x128xf32, #tpu.memory_space<vmem>>, vector<2x128xf32>,
    return
  }
}

</mosaic_0001>

<bundles_post_ra>
// kernel: tpu_custom_call.1
= control target key start
LH: loop header
LB: loop body
LE: loop exit
PB: predicated region body
PF: predicated region fallthrough
CT: control target
= control target key end

     0   :  { %12 = vsyncpa [#allocation4], 0  ;;  %s1411_s0 = inlined_call_operand.hbm [shape: f32[5,512], index: 0, kind: input, shape index: {}]   ;;  %s1412_s1 = inlined_call_operand.vmem [shape: s32[2], index: 1, kind: input, shape index: {}]   ;;  %s1413_s2 = inlined_call_operand.vmem [shape: f32[32,5], index: 2, kind: input, shape index: {}]   ;;  %s1414_s3 = inlined_call_operand.vmem [shape: bf16[65,128], index: 3, kind: input, shape index: {}]   ;;  %s1415_s4 = inlined_call_operand.hbm [shape: bf16[128,128], index: 4, kind: input, shape index: {}]   ;;  %s1416_s5 = inlined_call_operand.<no memory space> [shape: f32[1], index: 5, kind: input, shape index: {}]   ;;  %s1417_s6 = inlined_call_operand.hbm [shape: f32[2,128], index: 6, kind: output, shape index: {}]  }
   0x1   :  { %13 = vsyncpa [#allocation6], 0 }
   0x2   :  { %14 = vsyncpa [#allocation9], 0 }
   0x3   :  { %15 = vsyncpa [#allocation5], 0  ;;  %s32_s23 = sshll.u32 %s1412_s1, 4  ;;  %s1125_s24 = smov [#allocation3]   ;;  %s33_s23 = int_to_ptr.vmem [resolvable:$true] %s32_s23 }
   0x4   :  { %s22_s25 = sshll.u32 %s1125_s24, 4  ;;  %s1039_s28 = scalar_lea.hbm %s1411_s0, 512  ;;  %s23_s25 = int_to_ptr.vmem [resolvable:$true] %s22_s25 }
   0x5   :  { %p1040_p0 = scmp.ne.s32.totalorder %s1411_s0, %s1039_s28  ;;  %p1043_p1 = scmp.lt.u32.totalorder %s1039_s28, %s1411_s0 }
   0x7   :  { %p1045_p2 = pnand %p1043_p1, %p1040_p0 }
   0x9   :  { %1048 = shalt.err (!%p1045_p2)
}
   0xa   :  { %s1049_s9 = scalar_lea.vmem %s23_s25, 512  ;;  %p1054_p4 = scmp.lt.s32.totalorder %s23_s25, %s23_s25 }
   0xb   :  { %p1050_p3 = scmp.ne.s32.totalorder %s23_s25, %s1049_s9  ;;  %p1055_p5 = scmp.lt.s32.totalorder %s1049_s9, %s1049_s9 }
   0xd   :  { %p1056_p6 = por %p1055_p5, %p1054_p4 }
   0xf   :  { %p1057_p7 = pnand %p1056_p6, %p1050_p3 }
  0x11   :  { %1060 = shalt.err (!%p1057_p7)
}
  0x12   :  { %25 = dma.hbm_to_vmem [thread:$0]  %s1411_s0, 512, %s23_s25, [#allocation4]  }
  0x13   :  { %s1061_s11 = scalar_lea.vmem %s33_s23, 16  ;;  %p1066_p9 = scmp.lt.s32.totalorder %s33_s23, %s33_s23 }
  0x14   :  { %p1062_p8 = scmp.ne.s32.totalorder %s33_s23, %s1061_s11  ;;  %p1067_p10 = scmp.lt.s32.totalorder %s1061_s11, %s1061_s11 }
  0x16   :  { %p1068_p11 = por %p1067_p10, %p1066_p9 }
  0x18   :  { %p1069_p12 = pnand %p1068_p11, %p1062_p8 }
  0x1a   :  { %1072 = shalt.err (!%p1069_p12)
}
  0x1b   :  { %s1126_s12 = smov [#allocation7]   ;;  %s1127_s13 = smov [#allocation8]  }
  0x1c   :  { %35 = dma.vmem_to_smem %s33_s23, 16, %s1126_s12, [#allocation6]  }
  0x1d   :  { %s45_s14 = sshll.u32 %s1127_s13, 4  ;;  %s1073_s17 = scalar_lea.hbm %s1415_s4, 1024  ;;  %s46_s14 = int_to_ptr.vmem [resolvable:$true] %s45_s14 }
  0x1e   :  { %p1074_p13 = scmp.ne.s32.totalorder %s1415_s4, %s1073_s17  ;;  %p1077_p0 = scmp.lt.u32.totalorder %s1073_s17, %s1415_s4 }
  0x20   :  { %p1079_p1 = pnand %p1077_p0, %p1074_p13 }
  0x22   :  { %1082 = shalt.err (!%p1079_p1)
}
  0x23   :  { %s1083_s21 = scalar_lea.vmem %s46_s14, 1024  ;;  %p1088_p3 = scmp.lt.s32.totalorder %s46_s14, %s46_s14 }
  0x24   :  { %p1084_p2 = scmp.ne.s32.totalorder %s46_s14, %s1083_s21  ;;  %p1089_p4 = scmp.lt.s32.totalorder %s1083_s21, %s1083_s21 }
  0x26   :  { %p1090_p5 = por %p1089_p4, %p1088_p3 }
  0x28   :  { %p1091_p6 = pnand %p1090_p5, %p1084_p2 }
  0x2a   :  { %1094 = shalt.err (!%p1091_p6)
}
  0x2b   :  { %s1128_s22 = smov 64   ;;  %s1129_s23 = smov 4  }
  0x2c   :  { %51 = dma.hbm_to_vmem [thread:$0]  %s1415_s4, 1024, %s46_s14, [#allocation9], %s1128_s22, %s1128_s22, %s1129_s23  }
  0x2d   :  { %1117 = dma.done.wait [#allocation4], 512  }
  0x2e   :  { %1118 = vsyncadd [#allocation4], 4294966784 }
  0x2f   :  { %1119 = dma.done.wait [#allocation6], 16  }
  0x30   :  { %1120 = vsyncadd [#allocation6], 4294967280 }
  0x31   :  { %1121 = dma.done.wait [#allocation9], 1024  }
  0x32   :  { %1122 = vsyncadd [#allocation9], 4294966272 }
  0x33   :  { %63 = sfence }
  0x34   :  { %v70_v0 = vld [vmem:[#allocation3 + $0x8] sm:$0x1f]  ;;  %vm86_vm0 = vcmask 1044480   ;;  %v69_v1 = vld [vmem:[#allocation3] sm:$0x1f]  ;;  %v1130_v2 = vmov 0.0  }
  0x35   :  { %807 = vmatprep.subr.msk.mxu0 %vm86_vm0, %v70_v0  ;;  %163 = vmatprep.mubr.f32.mxu0 %v1130_v2  ;;  %v65_v3 = vld [vmem:[%s1413_s2] sm:$0xff]  ;;  %vm73_vm1 = vcmask 39936   ;;  %v72_v4 = vld [vmem:[#allocation3 + $0x18] sm:$0x1f]  ;;  %v71_v5 = vld [vmem:[#allocation3 + $0x10] sm:$0x1f] }
  0x36   :  { %808 = vmatpush1.msk.msra.mxu0 %vm86_vm0, %v69_v1  ;;  %v66_v6 = vld [vmem:[%s1413_s2 + $0x8] sm:$0xff]  ;;  %902 = vmatprep.subr.bf16.mxu1 %v1130_v2  ;;  %v67_v7 = vld [vmem:[%s1413_s2 + $0x10] sm:$0xff]  ;;  %v68_v8 = vld [vmem:[%s1413_s2 + $0x18] sm:$0xff]  ;;  %vm1132_vm2 = vmmov 0   ;;  %vm462_vm5 = vcmask 15360   ;;  %vm599_vm8 = vcmask 523264  }
  0x37   :  { %809 = vmatmul.mubr.msk.f32.vlgmr.msra.gmra.mrb[0].mxu0 %vm73_vm1, %v65_v3  ;;  %813 = vmatprep.subr.msk.mxu0 %vm86_vm0, %v72_v4  ;;  %vm1334_vm6 = vmpackc.low %vm462_vm5, %vm462_vm5  ;;  %vm649_vm10 = vcmask 1041408   ;;  %s1133_s19 = smov [#allocation10]  }
  0x38   :  { %814 = vmatpush1.msk.msra.mxu0 %vm86_vm0, %v71_v5  ;;  %169 = vmatprep.mubr.f32.mxu0 %v1130_v2  ;;  %s796_s0 = sshll.u32 %s1133_s19, 4  ;;  %s797_s0 = int_to_ptr.vmem [resolvable:$true] %s796_s0 }
  0x39   :  { %910 = vmatprep.mubr.msk.bf16.mxu1 %vm1132_vm2, %v1130_v2  ;;  %s1095_s20 = scalar_lea.vmem %s797_s0, 32  ;;  %p1100_p8 = scmp.lt.s32.totalorder %s797_s0, %s797_s0 }
  0x3a   :  { %p1096_p7 = scmp.ne.s32.totalorder %s797_s0, %s1095_s20  ;;  %p1101_p9 = scmp.lt.s32.totalorder %s1095_s20, %s1095_s20 }
  0x3b   :  { %810 = vmatmul.mubr.msk.f32.gmra.mrb[2].mxu0 %vm73_vm1, %v66_v6 }
  0x3c   :  { %175 = vmatprep.mubr.f32.mxu0 %v1130_v2  ;;  %p1102_p10 = por %p1101_p9, %p1100_p8 }
  0x3e   :  { %p1103_p11 = pnand %p1102_p10, %p1096_p7 }
  0x3f   :  { %811 = vmatmul.mubr.msk.f32.gmra.mrb[4].mxu0 %vm73_vm1, %v67_v7 }
  0x40   :  { %181 = vmatprep.mubr.f32.mxu0 %v1130_v2 }
  0x43   :  { %812 = vmatmul.mubr.msk.f32.gmra.mrb[6].mxu0 %vm73_vm1, %v68_v8 }
  0x44   :  { %252 = vmatprep.mubr.f32.mxu0 %v1130_v2 }
  0x47   :  { %815 = vmatmul.mubr.msk.f32.vlgmr.msra.gmra.mrb[8].mxu0 %vm73_vm1, %v65_v3 }
  0x48   :  { %258 = vmatprep.mubr.f32.mxu0 %v1130_v2 }
  0x4b   :  { %816 = vmatmul.mubr.msk.f32.gmra.mrb[10].mxu0 %vm73_vm1, %v66_v6 }
  0x4c   :  { %264 = vmatprep.mubr.f32.mxu0 %v1130_v2 }
  0x4f   :  { %817 = vmatmul.mubr.msk.f32.gmra.mrb[12].mxu0 %vm73_vm1, %v67_v7 }
  0x50   :  { %270 = vmatprep.mubr.f32.mxu0 %v1130_v2 }
  0x53   :  { %818 = vmatmul.mubr.msk.f32.gmra.mrb[14].mxu0 %vm73_vm1, %v68_v8 }
  0x54   :  { %899 = vmatprep.mubr.msk.f32.mxu0 %vm1132_vm2, %v1130_v2 }
 0x10a   :  { %v165_v9 = vpop.f32.mrb[0].mxu0 }
 0x10b   :  { %v819_v10 = vmul.f32 -1.442695, %v165_v9  ;;  %v1225_v11 = vpop.f32.mrb[1].mxu0 }
 0x10c   :  { %v820_v12 = vmul.f32 -1.442695, %v1225_v11 }
 0x10d   :  { %971 = vpow2.f32 %v819_v10 }
 0x10e   :  { %973 = vpow2.f32 %v820_v12  ;;  %v1228_v13 = vpop.f32.mrb[2].mxu0 }
 0x10f   :  { %v823_v14 = vmul.f32 -1.442695, %v1228_v13  ;;  %v1231_v15 = vpop.f32.mrb[3].mxu0 }
 0x110   :  { %v824_v16 = vmul.f32 -1.442695, %v1231_v15 }
 0x111   :  { %975 = vpow2.f32 %v823_v14 }
 0x112   :  { %977 = vpow2.f32 %v824_v16  ;;  %v1234_v17 = vpop.f32.mrb[4].mxu0 }
 0x113   :  { %v827_v18 = vmul.f32 -1.442695, %v1234_v17  ;;  %v1237_v19 = vpop.f32.mrb[5].mxu0 }
 0x114   :  { %v828_v20 = vmul.f32 -1.442695, %v1237_v19 }
 0x115   :  { %979 = vpow2.f32 %v827_v18 }
 0x116   :  { %981 = vpow2.f32 %v828_v20  ;;  %v1240_v21 = vpop.f32.mrb[6].mxu0 }
 0x117   :  { %v972_v22 = vpop.eup %971  ;;  %v831_v23 = vmul.f32 -1.442695, %v1240_v21  ;;  %v1243_v24 = vpop.f32.mrb[7].mxu0 }
 0x118   :  { %v974_v25 = vpop.eup %973  ;;  %v325_v26 = vadd.f32 1.0, %v972_v22  ;;  %v832_v27 = vmul.f32 -1.442695, %v1243_v24 }
 0x119   :  { %v326_v28 = vadd.f32 1.0, %v974_v25  ;;  %983 = vpow2.f32 %v831_v23 }
 0x11a   :  { %985 = vrcp.f32 %v325_v26  ;;  %v1246_v29 = vpop.f32.mrb[8].mxu0 }
 0x11b   :  { %v976_v30 = vpop.eup %975  ;;  %987 = vrcp.f32 %v326_v28  ;;  %v821_v31 = vmul.f32 -1.442695, %v1246_v29  ;;  %v1249_v32 = vpop.f32.mrb[9].mxu0 }
 0x11c   :  { %v978_v33 = vpop.eup %977  ;;  %v329_v34 = vadd.f32 1.0, %v976_v30  ;;  %989 = vpow2.f32 %v832_v27  ;;  %v822_v35 = vmul.f32 -1.442695, %v1249_v32 }
 0x11d   :  { %v330_v36 = vadd.f32 1.0, %v978_v33  ;;  %991 = vpow2.f32 %v821_v31 }
 0x11e   :  { %993 = vrcp.f32 %v329_v34  ;;  %v1252_v37 = vpop.f32.mrb[10].mxu0 }
 0x11f   :  { %v980_v38 = vpop.eup %979  ;;  %995 = vrcp.f32 %v330_v36  ;;  %v825_v39 = vmul.f32 -1.442695, %v1252_v37  ;;  %v1255_v40 = vpop.f32.mrb[11].mxu0 }
 0x120   :  { %v982_v41 = vpop.eup %981  ;;  %v333_v42 = vadd.f32 1.0, %v980_v38  ;;  %997 = vpow2.f32 %v822_v35  ;;  %v826_v43 = vmul.f32 -1.442695, %v1255_v40 }
 0x121   :  { %v334_v44 = vadd.f32 1.0, %v982_v41  ;;  %999 = vpow2.f32 %v825_v39 }
 0x122   :  { %1001 = vrcp.f32 %v333_v42  ;;  %v1258_v45 = vpop.f32.mrb[12].mxu0 }
 0x123   :  { %v984_v46 = vpop.eup %983  ;;  %1003 = vrcp.f32 %v334_v44  ;;  %v829_v47 = vmul.f32 -1.442695, %v1258_v45  ;;  %v1261_v48 = vpop.f32.mrb[13].mxu0 }
 0x124   :  { %v986_v49 = vpop.eup %985  ;;  %v337_v50 = vadd.f32 1.0, %v984_v46  ;;  %1005 = vpow2.f32 %v826_v43  ;;  %v830_v51 = vmul.f32 -1.442695, %v1261_v48 }
 0x125   :  { %v988_v52 = vpop.eup %987  ;;  %v1264_v53 = vmul.f32 %v986_v49, %v165_v9  ;;  %1007 = vpow2.f32 %v829_v47 }
 0x126   :  { %v990_v54 = vpop.eup %989  ;;  %v1267_v55 = vmul.f32 %v988_v52, %v1225_v11  ;;  %1009 = vrcp.f32 %v337_v50  ;;  %v1269_v56 = vpop.f32.mrb[14].mxu0 }
 0x127   :  { %v992_v57 = vpop.eup %991  ;;  %v338_v58 = vadd.f32 1.0, %v990_v54  ;;  %1011 = vpow2.f32 %v830_v51  ;;  %v833_v59 = vmul.f32 -1.442695, %v1269_v56  ;;  %v1272_v60 = vpop.f32.mrb[15].mxu0 }
 0x128   :  { %v994_v61 = vpop.eup %993  ;;  %v327_v62 = vadd.f32 1.0, %v992_v57  ;;  %v834_v63 = vmul.f32 -1.442695, %v1272_v60  ;;  %v391_v0 = vadd.f32 %v1267_v55, %v1264_v53  ;;  %v403_v1 = vmax.f32 %v1264_v53, %v1267_v55  ;;  %v960_v53 = vld [vmem:[%s1414_s3 + $0x8] sm:$0xff]   ;;  %v961_v55 = vld [vmem:[%s1414_s3 + $0x10] sm:$0xff]  }
 0x129   :  { %v996_v3 = vpop.eup %995  ;;  %v1280_v4 = vmul.f32 %v994_v61, %v1228_v13  ;;  %1013 = vrcp.f32 %v338_v58 }
 0x12a   :  { %v998_v5 = vpop.eup %997  ;;  %v1283_v6 = vmul.f32 %v996_v3, %v1231_v15  ;;  %1015 = vrcp.f32 %v327_v62  ;;  %392 = vadd.xlane.f32.xlu0 %v391_v0 }
 0x12b   :  { %v1000_v7 = vpop.eup %999  ;;  %v328_v8 = vadd.f32 1.0, %v998_v5  ;;  %1017 = vpow2.f32 %v833_v59 }
 0x12c   :  { %v1002_v9 = vpop.eup %1001  ;;  %v331_v10 = vadd.f32 1.0, %v1000_v7  ;;  %1019 = vpow2.f32 %v834_v63  ;;  %v394_v11 = vadd.f32 %v1283_v6, %v1280_v4  ;;  %v406_v12 = vmax.f32 %v1280_v4, %v1283_v6 }
 0x12d   :  { %v1004_v13 = vpop.eup %1003  ;;  %v381_v14 = vmul.f32 %v1002_v9, %v1234_v17  ;;  %1021 = vrcp.f32 %v328_v8 }
 0x12e   :  { %v1006_v15 = vpop.eup %1005  ;;  %v382_v16 = vmul.f32 %v1004_v13, %v1237_v19  ;;  %1023 = vrcp.f32 %v331_v10  ;;  %395 = vadd.xlane.f32.xlu0 %v394_v11 }
 0x12f   :  { %v1008_v18 = vpop.eup %1007  ;;  %v332_v20 = vadd.f32 1.0, %v1006_v15 }
 0x130   :  { %v1010_v22 = vpop.eup %1009  ;;  %v335_v23 = vadd.f32 1.0, %v1008_v18  ;;  %v397_v25 = vadd.f32 %v382_v16, %v381_v14  ;;  %v409_v26 = vmax.f32 %v381_v14, %v382_v16 }
 0x131   :  { %v1012_v27 = vpop.eup %1011  ;;  %1025 = vrcp.f32 %v332_v20  ;;  %v385_v28 = vmul.f32 %v1010_v22, %v1240_v21 }
 0x132   :  { %1027 = vrcp.f32 %v335_v23  ;;  %v336_v30 = vadd.f32 1.0, %v1012_v27  ;;  %398 = vadd.xlane.f32.xlu0 %v397_v25 }
 0x133   :  { %v1014_v17 = vpop.eup %1013 }
 0x134   :  { %v1016_v31 = vpop.eup %1015  ;;  %v386_v33 = vmul.f32 %v1014_v17, %v1243_v24  ;;  %1029 = vrcp.f32 %v336_v30 }
 0x135   :  { %v1018_v19 = vpop.eup %1017  ;;  %v375_v35 = vmul.f32 %v1016_v31, %v1246_v29 }
 0x136   :  { %v1020_v34 = vpop.eup %1019  ;;  %v339_v36 = vadd.f32 1.0, %v1018_v19  ;;  %v400_v38 = vadd.f32 %v386_v33, %v385_v28  ;;  %v412_v39 = vmax.f32 %v385_v28, %v386_v33 }
 0x137   :  { %v1022_v41 = vpop.eup %1021  ;;  %v340_v42 = vadd.f32 1.0, %v1020_v34 }
 0x138   :  { %v1024_v43 = vpop.eup %1023  ;;  %v376_v21 = vmul.f32 %v1022_v41, %v1249_v32  ;;  %1031 = vrcp.f32 %v339_v36 }
 0x139   :  { %1033 = vrcp.f32 %v340_v42  ;;  %v379_v44 = vmul.f32 %v1024_v43, %v1252_v37 }
 0x13a   :  { %v424_v46 = vadd.f32 %v376_v21, %v375_v35  ;;  %v436_v47 = vmax.f32 %v375_v35, %v376_v21 }
 0x13b   :  { %v1026_v24 = vpop.eup %1025 }
 0x13c   :  { %v1028_v49 = vpop.eup %1027  ;;  %v380_v50 = vmul.f32 %v1026_v24, %v1255_v40  ;;  %425 = vadd.xlane.f32.xlu1 %v424_v46  ;;  %v962_v46 = vld [vmem:[%s1414_s3 + $0x18] sm:$0xff]  }
 0x13d   :  { %v383_v29 = vmul.f32 %v1028_v49, %v1258_v45  ;;  %v1131_v45 = vmov 0.0|0.0  }
 0x13e   :  { %v1030_v51 = vpop.eup %1029  ;;  %v427_v52 = vadd.f32 %v380_v50, %v379_v44  ;;  %v439_v54 = vmax.f32 %v379_v44, %v380_v50  ;;  %934 = vmatprep.subr.bf16.mxu0 %v1131_v45  ;;  %v963_v50 = vld [vmem:[#allocation8] sm:$0xff]  }
 0x13f   :  { %v384_v57 = vmul.f32 %v1030_v51, %v1261_v48  ;;  %v959_v48 = vld [vmem:[%s1414_s3] sm:$0xff]   ;;  %v965_v51 = vld [vmem:[#allocation8 + $0x10] sm:$0xff]  }
 0x140   :  { %428 = vadd.xlane.f32.xlu1 %v427_v52  ;;  %903 = vmatpush3.bf16.msra.mxu1 %v959_v48  ;;  %v966_v52 = vld [vmem:[#allocation8 + $0x18] sm:$0xff]  }
 0x141   :  { %v430_v32 = vadd.f32 %v384_v57, %v383_v29  ;;  %v442_v58 = vmax.f32 %v383_v29, %v384_v57  ;;  %904 = vmatprep.subr.bf16.mxu1 %v1130_v2  ;;  %v964_v29 = vld [vmem:[#allocation8 + $0x8] sm:$0xff]  }
 0x142   :  { %v1032_v59 = vpop.eup %1031 }
 0x143   :  { %v1034_v61 = vpop.eup %1033  ;;  %v387_v37 = vmul.f32 %v1032_v59, %v1269_v56  ;;  %431 = vadd.xlane.f32.xlu0 %v430_v32 }
 0x144   :  { %v388_v62 = vmul.f32 %v1034_v61, %v1272_v60  ;;  %401 = vadd.xlane.f32.xlu1 %v400_v38  ;;  %905 = vmatpush3.bf16.msra.mxu1 %v960_v53  ;;  %v389_v60 = vlaneseq  ;;  %v645_v61 = vstv %s1416_s5  ;;  %s859_s5 = sld [smem:[#allocation7 + $0x1]] }
 0x145   :  { %906 = vmatprep.subr.bf16.mxu1 %v1130_v2 }
 0x146   :  { %v433_v40 = vadd.f32 %v388_v62, %v387_v37  ;;  %v445_v63 = vmax.f32 %v387_v37, %v388_v62  ;;  %v1320_v0 = vand.u32 127, %v389_v60  ;;  %v1368_v43 = vshrl.u32 %v389_v60, 7  ;;  %v968_v60 = vld [vmem:[#allocation8 + $0x28] sm:$0xff]  }
 0x147   :  { %404 = vmax.xlane.f32.xlu0 %v403_v1 }
 0x148   :  { %434 = vadd.xlane.f32.xlu1 %v433_v40  ;;  %907 = vmatpush3.bf16.msra.mxu1 %v961_v55  ;;  %vm415_vm3 = vcmp.eq.s32.totalorder %v1320_v0, 0  ;;  %vm448_vm4 = vcmp.eq.s32.totalorder %v1320_v0, 1  ;;  %vm459_vm7 = vcmp.eq.s32.totalorder %v1368_v43, %v1320_v0  ;;  %v573_v32 = vsub.s32 0, %v1368_v43 }
 0x149   :  { %908 = vmatprep.subr.bf16.mxu1 %v1130_v2  ;;  %v835_v44 = vsel %vm459_vm7, 1.0, %v1130_v2  ;;  %vm778_vm11 = vcmp.eq.s32.totalorder %v1368_v43, 0  ;;  %vm782_vm12 = vcmp.eq.s32.totalorder %v1368_v43, 1 }
 0x14b   :  { %437 = vmax.xlane.f32.xlu0 %v436_v47 }
 0x14c   :  { %407 = vmax.xlane.f32.xlu1 %v406_v12  ;;  %909 = vmatpush3.bf16.msra.mxu1 %v962_v46 }
 0x14d   :  { %914 = vmatprep.subr.bf16.mxu1 %v1130_v2 }
 0x14f   :  { %410 = vmax.xlane.f32.xlu0 %v409_v26 }
 0x150   :  { %440 = vmax.xlane.f32.xlu1 %v439_v54  ;;  %v568_v54 = vld [vmem:[%s1414_s3 + $0x20] sm:$0x1]  ;;  %s779_s3 = sld [smem:[#allocation7]] }
 0x151   :  { %v570_v57 = vunpack.c.l.bf16 %v568_v54 }
 0x153   :  { %443 = vmax.xlane.f32.xlu0 %v442_v58  ;;  %v574_v58 = vrot.slane %v570_v57, %v573_v32 }
 0x154   :  { %413 = vmax.xlane.f32.xlu1 %v412_v39 }
 0x158   :  { %446 = vmax.xlane.f32.xlu1 %v445_v63 }
 0x1b7   :  { %v393_v56 = vpop.xlane.xlu0 %392 }
 0x1b8   :  { %v416_v5 = vsel %vm415_vm3, %v393_v56, 0.0  ;;  %v967_v56 = vld [vmem:[#allocation8 + $0x20] sm:$0xff]  }
 0x1bb   :  { %v396_v1 = vpop.xlane.xlu0 %395 }
 0x1bc   :  { %v417_v6 = vsel %vm415_vm3, %v396_v1, 0.0  ;;  %v969_v1 = vld [vmem:[#allocation8 + $0x30] sm:$0xff]  }
 0x1bf   :  { %v399_v4 = vpop.xlane.xlu0 %398 }
 0x1c0   :  { %v418_v15 = vsel %vm415_vm3, %v399_v4, 0.0 }
 0x1c9   :  { %v426_v3 = vpop.xlane.xlu1 %425 }
 0x1ca   :  { %v449_v8 = vsel %vm448_vm4, %v426_v3, %v416_v5  ;;  %v970_v3 = vld [vmem:[#allocation8 + $0x38] sm:$0xff]  }
 0x1cd   :  { %v429_v7 = vpop.xlane.xlu1 %428 }
 0x1ce   :  { %v450_v9 = vsel %vm448_vm4, %v429_v7, %v417_v6 }
 0x1cf   :  { %v935_v11 = vpack.c.bf16 %v450_v9, %v449_v8 }
 0x1d0   :  { %v432_v12 = vpop.xlane.xlu0 %431 }
 0x1d1   :  { %937 = vmatpush3.bf16.xpose.msk.msra.mxu0 %vm1334_vm6, %v935_v11  ;;  %v402_v13 = vpop.xlane.xlu1 %401  ;;  %v451_v20 = vsel %vm448_vm4, %v432_v12, %v418_v15 }
 0x1d2   :  { %938 = vmatprep.subr.bf16.mxu0 %v1131_v45  ;;  %v419_v16 = vsel %vm415_vm3, %v402_v13, 0.0 }
 0x1d4   :  { %v405_v14 = vpop.xlane.xlu0 %404 }
 0x1d5   :  { %v435_v18 = vpop.xlane.xlu1 %434  ;;  %v420_v27 = vsel %vm415_vm3, %v405_v14, 0.0 }
 0x1d6   :  { %v452_v22 = vsel %vm448_vm4, %v435_v18, %v419_v16 }
 0x1d7   :  { %v939_v23 = vpack.c.bf16 %v452_v22, %v451_v20 }
 0x1d8   :  { %v438_v25 = vpop.xlane.xlu0 %437 }
 0x1d9   :  { %941 = vmatpush3.bf16.xpose.msk.msra.mxu0 %vm1334_vm6, %v939_v23  ;;  %v408_v26 = vpop.xlane.xlu1 %407  ;;  %v453_v31 = vsel %vm448_vm4, %v438_v25, %v420_v27  ;;  %v784_v23 = vstv %s859_s5 }
 0x1da   :  { %942 = vmatprep.subr.bf16.mxu0 %v1131_v45  ;;  %v421_v28 = vsel %vm415_vm3, %v408_v26, 0.0 }
 0x1dc   :  { %v411_v30 = vpop.xlane.xlu0 %410 }
 0x1dd   :  { %v441_v17 = vpop.xlane.xlu1 %440  ;;  %v422_v36 = vsel %vm415_vm3, %v411_v30, 0.0 }
 0x1de   :  { %v454_v33 = vsel %vm448_vm4, %v441_v17, %v421_v28 }
 0x1df   :  { %v943_v19 = vpack.c.bf16 %v454_v33, %v453_v31 }
 0x1e0   :  { %v444_v35 = vpop.xlane.xlu0 %443 }
 0x1e1   :  { %945 = vmatpush3.bf16.xpose.msk.msra.mxu0 %vm1334_vm6, %v943_v19  ;;  %v414_v34 = vpop.xlane.xlu1 %413  ;;  %v455_v41 = vsel %vm448_vm4, %v444_v35, %v422_v36 }
 0x1e2   :  { %946 = vmatprep.subr.bf16.mxu0 %v1131_v45  ;;  %v423_v38 = vsel %vm415_vm3, %v414_v34, 0.0 }
 0x1e5   :  { %v447_v39 = vpop.xlane.xlu1 %446 }
 0x1e6   :  { %v456_v42 = vsel %vm448_vm4, %v447_v39, %v423_v38 }
 0x1e7   :  { %v947_v21 = vpack.c.bf16 %v456_v42, %v455_v41 }
 0x1e9   :  { %949 = vmatpush3.bf16.xpose.msk.msra.mxu0 %vm1334_vm6, %v947_v21 }
 0x1f0   :  { %900 = vmatmul.mubr.msk.f32.vlgmr.msra.gmra.mrb[16].mxu0 %vm462_vm5, %v835_v44 }
 0x2c3   :  { %v556_v47 = vpop.f32.mrb[16].mxu0 }
 0x2c4   :  { %v569_v24 = vpack.c.bf16 %v556_v47, %v556_v47  ;;  %v901_v49 = vpop.f32.mrb[17].mxu0 }
 0x2c6   :  { %911 = vmatmul.mubr.msk.bf16.vlgmr.msra.gmra.mrb[0].mxu1 %vm599_vm8, %v569_v24 }
 0x2c7   :  { %930 = vmatprep.mubr.msk.bf16.mxu1 %vm1132_vm2, %v1130_v2  ;;  %915 = vmatpush3.bf16.msra.mxu1 %v963_v50 }
 0x2c8   :  { %916 = vmatprep.subr.bf16.mxu1 %v1130_v2 }
 0x2cb   :  { %917 = vmatpush3.bf16.msra.mxu1 %v964_v29 }
 0x2cc   :  { %918 = vmatprep.subr.bf16.mxu1 %v1130_v2 }
 0x2cf   :  { %919 = vmatpush3.bf16.msra.mxu1 %v965_v51 }
 0x2d0   :  { %920 = vmatprep.subr.bf16.mxu1 %v1130_v2 }
 0x2d3   :  { %921 = vmatpush3.bf16.msra.mxu1 %v966_v52 }
 0x2d4   :  { %922 = vmatprep.subr.bf16.mxu1 %v1130_v2 }
 0x2d7   :  { %923 = vmatpush3.bf16.msra.mxu1 %v967_v56 }
 0x2d8   :  { %924 = vmatprep.subr.bf16.mxu1 %v1130_v2 }
 0x2db   :  { %925 = vmatpush3.bf16.msra.mxu1 %v968_v60 }
 0x2dc   :  { %926 = vmatprep.subr.bf16.mxu1 %v1130_v2 }
 0x2df   :  { %927 = vmatpush3.bf16.msra.mxu1 %v969_v1 }
 0x2e0   :  { %928 = vmatprep.subr.bf16.mxu1 %v1130_v2  ;;  %v780_v2 = vstv %s779_s3 }
 0x2e1   :  { %v781_v22 = vsel %vm778_vm11, %v780_v2, 4294967295 }
 0x2e2   :  { %v785_v28 = vsel %vm782_vm12, %v784_v23, %v781_v22 }
 0x2e3   :  { %929 = vmatpush3.bf16.msra.mxu1 %v970_v3  ;;  %vm786_vm15 = vcmp.eq.s32.totalorder %v1320_v0, %v785_v28 }
 0x399   :  { %v637_v59 = vpop.f32.mrb[0].mxu1 }
 0x39a   :  { %v638_v37 = vadd.f32 %v637_v59, %v574_v58  ;;  %v912_v62 = vpop.f32.mrb[1].mxu1 }
 0x39b   :  { %v640_v40 = vpop.f32.mrb[2].mxu1 }
 0x39c   :  { %vm644_vm9 = vcmp.ge.f32.partialorder %v638_v37, 0.0  ;;  %v646_v63 = vmul.f32 %v645_v61, %v638_v37  ;;  %v913_v45 = vpop.f32.mrb[3].mxu1 }
 0x39e   :  { %v647_v48 = vsel %vm644_vm9, %v638_v37, %v646_v63 }
 0x39f   :  { %v648_v53 = vmul.f32 %v647_v48, %v647_v48 }
 0x3a1   :  { %v650_v55 = vsel %vm649_vm10, %v648_v53, 0.0 }
 0x3a2   :  { %651 = vadd.xlane.f32.xlu0 %v650_v55 }
 0x42f   :  { %v652_v4 = vpop.xlane.xlu0 %651 }
 0x430   :  { %v653_v5 = vmax.f32 %v652_v4, 1e-24 }
 0x432   :  { %1035 = vrsqrt.f32 %v653_v5 }
 0x43c   :  { %v1036_v6 = vpop.eup %1035 }
 0x43d   :  { %v655_v7 = vmul.f32 %v1036_v6, %v647_v48 }
 0x43f   :  { %v656_v8 = vpack.c.bf16 %v655_v7, %v655_v7 }
 0x441   :  { %931 = vmatmul.mubr.bf16.vlgmr.msra.gmra.mrb[4].mxu1 %v656_v8 }
 0x514   :  { %v755_v9 = vpop.f32.mrb[4].mxu1 }
 0x515   :  { %v761_v10 = vmul.f32 %v755_v9, %v755_v9  ;;  %v932_v11 = vpop.f32.mrb[5].mxu1  ;;  %v772_v30 = vmul.f32 0.87758255, %v755_v9  ;;  %v858_v33 = vadd.f32 -0.23971277, %v755_v9 }
 0x516   :  { %v758_v12 = vpop.f32.mrb[6].mxu1  ;;  %vm775_vm0 = vcmp.gt.f32.partialorder %v755_v9, -0.87758255 }
 0x517   :  { %v762_v13 = vsub.f32 1.0, %v761_v10  ;;  %v933_v14 = vpop.f32.mrb[7].mxu1 }
 0x519   :  { %v763_v15 = vmax.f32 %v762_v13, 0.0 }
 0x51b   :  { %v764_v16 = vmin.f32 %v763_v15, 1.0 }
 0x51d   :  { %1037 = vrsqrt.f32 %v764_v16  ;;  %vm767_vm13 = vcmp.eq.f32.partialorder %v764_v16, inf  ;;  %v770_v25 = vand.u32 2147483648, %v764_v16  ;;  %vm769_vm14 = vcmp.eq.f32.partialorder %v764_v16, 0.0 }
 0x527   :  { %v1038_v18 = vpop.eup %1037 }
 0x528   :  { %v766_v20 = vmul.f32 %v1038_v18, %v764_v16 }
 0x52a   :  { %v768_v26 = vsel %vm767_vm13, %v764_v16, %v766_v20 }
 0x52b   :  { %v771_v27 = vsel %vm769_vm14, %v770_v25, %v768_v26 }
 0x52c   :  { %v773_v17 = vmul.f32 0.47942555, %v771_v27 }
 0x52e   :  { %v774_v31 = vsub.f32 %v772_v30, %v773_v17 }
 0x530   :  { %v777_v19 = vsel %vm775_vm0, %v774_v31, %v858_v33 }
 0x531   :  { %v787_v34 = vsel %vm786_vm15, %v777_v19, %v755_v9 }
 0x532   :  { %v788_v35 = vmul.f32 30.0, %v787_v34 }
 0x534   :  { %789 = vst [vmem:[#allocation10] sm:$0x3] %v788_v35 }
 0x535   :  { %1106 = shalt.err (!%p1103_p11)
}
 0x536   :  { %s1107_s23 = scalar_lea.hbm %s1417_s6, 32 }
 0x537   :  { %p1108_p12 = scmp.ne.s32.totalorder %s1417_s6, %s1107_s23  ;;  %p1111_p13 = scmp.lt.u32.totalorder %s1107_s23, %s1417_s6 }
 0x539   :  { %p1113_p0 = pnand %p1111_p13, %p1108_p12 }
 0x53b   :  { %1116 = shalt.err (!%p1113_p0)
}
 0x53c   :  { %799 = dma.vmem_to_hbm [thread:$0]  %s797_s0, 32, %s1417_s6, [#allocation5]  }
 0x53d   :  { %1123 = dma.done.wait [#allocation5], 32  }
 0x53e   :  { %1124 = vsyncadd [#allocation5], 4294967264 }
 0x53f   :  { %803 = vsyncpa [#allocation4], 1 }
 0x540   :  { %804 = vsyncpa [#allocation9], 1 }
 0x541   :  { %805 = vsyncpa [#allocation5], 1 }
 0x542   :  { %806 = vsyncpa [#allocation6], 1 }

</bundles_post_ra>
